<compile_context>
chip_gen: v6e
topology: v6e:2x2x1
jax: 0.10.0
libtpu: 0.0.40
codegen_flags: <defaults>
</compile_context>

<pallas_src>
import jax
import jax.numpy as jnp
from jax.experimental import pallas as pl
from jax.experimental.pallas import tpu as pltpu


def _round_up(n, m):
    return ((n + m - 1) // m) * m


def simple_linear_kernel(x_ref, w1t_ref, b1_ref, w2eff_ref, beff_ref, o_ref):
    # fc1 + ReLU: the only MXU matmul, (TB,128) @ (128,128), f32 accumulation.
    h = jnp.dot(x_ref[...], w1t_ref[...], preferred_element_type=jnp.float32)
    h = jnp.maximum(h + b1_ref[...], 0.0)              # (TB, 128); bias (1,128) broadcasts

    # fc2 with fc3 folded in: VPU multiply + XLU lane reduction (MXU stays free).
    z = jnp.sum(h * w2eff_ref[...], axis=-1)            # (TB,)
    z = z + beff_ref[0, 0]                               # scalar from SMEM

    # Lane-dense store: (TB,) -> (1, 1, TB) so the writeback uses full 128-lane
    # stores (no vst.msk) and the output buffer pads only 8x in VMEM.
    o_ref[...] = z.reshape(1, 1, -1).astype(o_ref.dtype)


def simple_linear(x, w1, b1, w2, b2, w3, b3, *, tb=None, matmul_dtype=None,
                  num_x_buffers=2):
    """SimpleLinear forward. x:(B,128) w1:(128,128) b1:(128,) w2:(1,128) b2:(1,)
    w3:(1,1) b3:(1,). Returns (B,1)."""
    B, D = x.shape
    assert D == 128, "SimpleLinear expects 128 input features"

    # Fold fc3 into fc2:  fc3(fc2(h)) = h @ (w3*w2)^T + (w3*b2 + b3)   (exact)
    w3s = w3.reshape(()).astype(jnp.float32)
    w_eff = (w3s * w2.astype(jnp.float32)).reshape(1, D)                  # (1,128) VMEM
    b_eff = (w3s * b2.astype(jnp.float32).reshape(())
             + b3.reshape(()).astype(jnp.float32)).reshape(1, 1)          # (1,1)  SMEM

    # fc1 weights/bias. Optionally cast the matmul inputs to bf16 (halves the
    # dominant x HBM traffic, single-pass MXU; changes numerics vs f32).
    if matmul_dtype is None:
        matmul_dtype = jnp.float32
    w1t = w1.T.astype(matmul_dtype)                                       # (128,128): x @ w1.T
    b1r = b1.reshape(1, D).astype(jnp.float32)
    x_in = x.astype(matmul_dtype)

    # Batch tile: kernel is HBM-bound on streaming x (K=128 => ~64 flops/byte),
    # so use large tiles (default 8192 rows) to amortize per-grid-step overhead,
    # but keep >= 2 tiles for moderate batches so v7x's two TCs both get work.
    if tb is None:
        tb = min(8192, _round_up(max(B, 1), 8))
        if B >= 16:
            tb = min(tb, _round_up((B + 1) // 2, 8))
    tb = max(8, _round_up(tb, 8))

    n_tiles = pl.cdiv(B, tb)
    Bp = n_tiles * tb
    if Bp != B:
        # Pad so the tail tile never reads OOB (no VMEM bounds check); padded
        # rows compute garbage and are sliced off below.
        x_in = jnp.pad(x_in, ((0, Bp - B), (0, 0)))

    x_bytes = jnp.dtype(matmul_dtype).itemsize
    w_bytes = jnp.dtype(matmul_dtype).itemsize

    # x BlockSpec; optionally deepen the pipeline (worth sweeping on v7x).
    x_spec_kwargs = {}
    if num_x_buffers != 2:
        x_spec_kwargs["pipeline_mode"] = pl.Buffered(num_x_buffers)
    x_spec = pl.BlockSpec((tb, D), lambda i: (i, 0), **x_spec_kwargs)

    # Scoped-VMEM estimate: buffered x tiles + double-buffered (8x-padded)
    # output tiles + resident weights. Raise the limit only when the v5e
    # 16 MiB default would be exceeded; stay under v7x's 64 MiB physical VMEM.
    vmem_est = (num_x_buffers * tb * D * x_bytes
                + 2 * 8 * tb * 4
                + D * D * w_bytes + 3 * D * 4)
    vmem_limit = None
    if vmem_est + (2 << 20) > (16 << 20):
        vmem_limit = min(vmem_est + (4 << 20), 60 << 20)

    cost = pl.CostEstimate(
        flops=2 * Bp * D * D + 3 * Bp * D,                 # fc1 matmul + fused fc2/fc3
        transcendentals=0,
        bytes_accessed=Bp * D * x_bytes + Bp * 4 + D * D * w_bytes + 3 * D * 4 + 4,
    )

    out = pl.pallas_call(
        simple_linear_kernel,
        out_shape=jax.ShapeDtypeStruct((n_tiles, 1, tb), x.dtype),
        grid=(n_tiles,),
        in_specs=[
            x_spec,                                              # x: tiled over batch (pipelined)
            pl.BlockSpec((D, D), lambda i: (0, 0)),              # w1t: resident across all tiles
            pl.BlockSpec((1, D), lambda i: (0, 0)),              # b1:  resident
            pl.BlockSpec((1, D), lambda i: (0, 0)),              # w_eff (fc2*fc3 folded): resident
            pl.BlockSpec(memory_space=pltpu.MemorySpace.SMEM),   # b_eff scalar in SMEM
        ],
        out_specs=pl.BlockSpec((1, 1, tb), lambda i: (i, 0, 0)),  # lane-dense output row per tile
        compiler_params=pltpu.CompilerParams(
            dimension_semantics=("parallel",),                    # shard tiles across v7x's 2 TCs
            vmem_limit_bytes=vmem_limit,
        ),
        cost_estimate=cost,
    )(x_in, w1t, b1r, w_eff, b_eff)

    out = out.reshape(Bp, 1)                                      # (n_tiles,1,tb) -> (Bp,1)
    return out[:B] if Bp != B else out


def reference(x, w1, b1, w2, b2, w3, b3):
    y = jnp.maximum(x @ w1.T + b1, 0.0)
    z = y @ w2.T + b2
    return z @ w3.T + b3


if __name__ == "__main__":
    key = jax.random.PRNGKey(0)
    kx, k1, k2, k3, k4, k5, k6 = jax.random.split(key, 7)

    B = 20  # not a multiple of the tile -> exercises tail padding + multi-tile grid
    x = jax.random.normal(kx, (B, 128), dtype=jnp.float32)

    # Deterministic parameter init (uniform, PyTorch-like scale 1/sqrt(fan_in)).
    s = 1.0 / 128 ** 0.5
    w1 = jax.random.uniform(k1, (128, 128), jnp.float32, -s, s)
    b1 = jax.random.uniform(k2, (128,), jnp.float32, -s, s)
    w2 = jax.random.uniform(k3, (1, 128), jnp.float32, -s, s)
    b2 = jax.random.uniform(k4, (1,), jnp.float32, -s, s)
    w3 = jax.random.uniform(k5, (1, 1), jnp.float32, -1.0, 1.0)
    b3 = jax.random.uniform(k6, (1,), jnp.float32, -1.0, 1.0)

    ref = reference(x, w1, b1, w2, b2, w3, b3)

    # Small explicit tile (8) -> 3-step grid: exercises multi-tile + tail pad.
    out_small = jax.block_until_ready(simple_linear(x, w1, b1, w2, b2, w3, b3, tb=8))
    assert out_small.shape == (B, 1), out_small.shape
    assert jnp.allclose(out_small, ref, atol=1e-5, rtol=1e-5), "mismatch (tb=8)"

    # Default tile selection path (>=2 tiles for this batch, lane-dense output).
    out_def = jax.block_until_ready(simple_linear(x, w1, b1, w2, b2, w3, b3))
    assert out_def.shape == (B, 1), out_def.shape
    assert jnp.allclose(out_def, ref, atol=1e-5, rtol=1e-5), "mismatch (default tb)"

    print("KERNEL_OK")
</pallas_src>

<mosaic_0001>
module attributes {stable_mosaic.version = 11 : i64} {
  func.func @simple_linear_kernel(%arg0: i32, %arg1: memref<8x128xf32, #tpu.memory_space<vmem>>, %arg2: memref<128x128xf32, #tpu.memory_space<vmem>>, %arg3: memref<1x128xf32, #tpu.memory_space<vmem>>, %arg4: memref<1x128xf32, #tpu.memory_space<vmem>>, %arg5: memref<1x1xf32, #tpu.memory_space<smem>>, %arg6: memref<1x1x8xf32, #tpu.memory_space<vmem>>) attributes {dimension_semantics = [#tpu.dimension_semantics<parallel>], iteration_bounds = array<i64: 3>, scalar_prefetch = 0 : i64, scratch_operands = 0 : i64, tpu.core_type = #tpu.core_type<tc>, window_params = [{transform_indices = @transform_0, window_bounds = array<i64: 8, 128>}, {pipeline_mode = #tpu.pipeline_mode<synchronous>, transform_indices = @transform_1, window_bounds = array<i64: 128, 128>}, {pipeline_mode = #tpu.pipeline_mode<synchronous>, transform_indices = @transform_2, window_bounds = array<i64: 1, 128>}, {pipeline_mode = #tpu.pipeline_mode<synchronous>, transform_indices = @transform_3, window_bounds = array<i64: 1, 128>}, {transform_indices = @transform_4, window_bounds = array<i64: 1, 1>}, {transform_indices = @transform_5, window_bounds = array<i64: 1, 1, 8>}]} {
    %c0 = arith.constant 0 : index
    %c0_0 = arith.constant 0 : index
    %0 = vector.load %arg1[%c0, %c0_0] : memref<8x128xf32, #tpu.memory_space<vmem>>, vector<8x128xf32>
    %c0_1 = arith.constant 0 : index
    %c0_2 = arith.constant 0 : index
    %1 = vector.load %arg2[%c0_1, %c0_2] : memref<128x128xf32, #tpu.memory_space<vmem>>, vector<128x128xf32>
    %cst = arith.constant dense<0.000000e+00> : vector<8x128xf32>
    %2 = tpu.matmul %0, %1, %cst {dimension_numbers = #tpu.dot_dimension_numbers<[1], [0], [0], [1], [0, 0, 1, 1], [], []>} : vector<8x128xf32>, vector<128x128xf32>, vector<8x128xf32> -> vector<8x128xf32>
    %c0_3 = arith.constant 0 : index
    %c0_4 = arith.constant 0 : index
    %3 = vector.load %arg3[%c0_3, %c0_4] : memref<1x128xf32, #tpu.memory_space<vmem>>, vector<1x128xf32>
    %4 = vector.broadcast %3 : vector<1x128xf32> to vector<8x128xf32>
    %5 = arith.addf %2, %4 : vector<8x128xf32>
    %cst_5 = arith.constant 0.000000e+00 : f32
    %6 = vector.broadcast %cst_5 : f32 to vector<8x128xf32>
    %7 = arith.maximumf %5, %6 : vector<8x128xf32>
    %c0_6 = arith.constant 0 : index
    %c0_7 = arith.constant 0 : index
    %8 = vector.load %arg4[%c0_6, %c0_7] : memref<1x128xf32, #tpu.memory_space<vmem>>, vector<1x128xf32>
    %9 = vector.broadcast %8 : vector<1x128xf32> to vector<8x128xf32>
    %10 = arith.mulf %7, %9 : vector<8x128xf32>
    %cst_8 = arith.constant dense<0.000000e+00> : vector<8xf32>
    %11 = vector.multi_reduction <add>, %10, %cst_8 [1] : vector<8x128xf32> to vector<8xf32>
    %c0_9 = arith.constant 0 : index
    %c0_10 = arith.constant 0 : index
    %12 = memref.load %arg5[%c0_9, %c0_10] : memref<1x1xf32, #tpu.memory_space<smem>>
    %13 = vector.broadcast %12 : f32 to vector<8xf32>
    %14 = arith.addf %11, %13 : vector<8xf32>
    %15 = vector.shape_cast %14 : vector<8xf32> to vector<1x1x8xf32>
    %c0_11 = arith.constant 0 : index
    %c0_12 = arith.constant 0 : index
    %c0_13 = arith.constant 0 : index
    %16 = vector.load %arg6[%c0_11, %c0_12, %c0_13] : memref<1x1x8xf32, #tpu.memory_space<vmem>>, vector<1x1x8xf32>
    tpu.vector_store %arg6[%c0_11, %c0_12, %c0_13], %15 {strides = array<i32>} : memref<1x1x8xf32, #tpu.memory_space<vmem>>, vector<1x1x8xf32>,
    return
  }
  func.func @transform_0(%arg0: i32) -> (i32, i32) {
    %c0_i32 = arith.constant 0 : i32
    %c0_i32_0 = arith.constant 0 : i32
    return %arg0, %c0_i32 : i32, i32
  }
  func.func @transform_1(%arg0: i32) -> (i32, i32) {
    %c0_i32 = arith.constant 0 : i32
    %c0_i32_0 = arith.constant 0 : i32
    %c0_i32_1 = arith.constant 0 : i32
    return %c0_i32, %c0_i32_0 : i32, i32
  }
  func.func @transform_2(%arg0: i32) -> (i32, i32) {
    %c0_i32 = arith.constant 0 : i32
    %c0_i32_0 = arith.constant 0 : i32
    %c0_i32_1 = arith.constant 0 : i32
    return %c0_i32, %c0_i32_0 : i32, i32
  }
  func.func @transform_3(%arg0: i32) -> (i32, i32) {
    %c0_i32 = arith.constant 0 : i32
    %c0_i32_0 = arith.constant 0 : i32
    %c0_i32_1 = arith.constant 0 : i32
    return %c0_i32, %c0_i32_0 : i32, i32
  }
  func.func @transform_4(%arg0: i32) -> (i32, i32) {
    %c0_i32 = arith.constant 0 : i32
    %c0_i32_0 = arith.constant 0 : i32
    %c0_i32_1 = arith.constant 0 : i32
    return %c0_i32, %c0_i32_0 : i32, i32
  }
  func.func @transform_5(%arg0: i32) -> (i32, i32, i32) {
    %c0_i32 = arith.constant 0 : i32
    %c0_i32_0 = arith.constant 0 : i32
    %c0_i32_1 = arith.constant 0 : i32
    return %arg0, %c0_i32, %c0_i32_0 : i32, i32, i32
  }
}

</mosaic_0001>

<bundles_post_ra>
// kernel: tpu_custom_call.1
= control target key start
LH: loop header
LB: loop body
LE: loop exit
PB: predicated region body
PF: predicated region fallthrough
CT: control target
= control target key end

     0   :  { %s915_s0 = inlined_call_operand.hbm [shape: f32[24,128], index: 0, kind: input, shape index: {}]   ;;  %s916_s1 = inlined_call_operand.hbm [shape: f32[128,128], index: 1, kind: input, shape index: {}]   ;;  %s917_s2 = inlined_call_operand.vmem [shape: f32[1,128], index: 2, kind: input, shape index: {}]   ;;  %s918_s3 = inlined_call_operand.vmem [shape: f32[1,128], index: 3, kind: input, shape index: {}]   ;;  %s919_s4 = inlined_call_operand.<no memory space> [shape: f32[1,1], index: 4, kind: input, shape index: {}]   ;;  %s920_s5 = inlined_call_operand.hbm [shape: f32[3,1,8], index: 5, kind: output, shape index: {}]  }
   0x1   :  { %10 = sst [smem:[#allocation2]] %s919_s4 }
   0x2   :  { %11 = vsyncpa [#allocation4], 0 }
   0x3   :  { %13 = vsyncpa [#allocation4 + $0x1], 0 }
   0x4   :  { %14 = vsyncpa [#allocation7], 0 }
   0x5   :  { %15 = vsyncpa [#allocation5], 0 }
   0x6   :  { %17 = vsyncpa [#allocation5 + $0x1], 0  ;;  %s753_s20 = smov 0   ;;  %s755_s21 = smov 0  }
   0x7   :  { %s757_s22 = smov 0   ;;  %s759_s23 = smov 0  }
   0x8 LB: > { %s774_s4 = sadd.s32 4294967295, %s711_s23   ;;  %s462_s24 = sadd.s32 4294967294, %s711_s23   ;;  %s711_s23 = sphi %s759_s23, %s941_s23   ;;  %s707_s22 = sphi %s757_s22, %s940_s22   ;;  %s703_s21 = sphi %s755_s21, %s939_s21   ;;  %s699_s20 = sphi %s753_s20, %s938_s20  }
   0x9   : > { %p43_p0 = scmp.ne.s32.totalorder %s703_s21, %s699_s20  ;;  %p921_p1 = scmp.eq.s32.totalorder %s774_s4, 0 }
   0xa   : > { %p157_p3 = scmp.eq.s32.totalorder %s462_s24, 2  ;;  %p463_p5 = scmp.ge.s32.totalorder %s711_s23, 1 }
   0xb   : > { %p783_p4 = por %p921_p1, %p43_p0  ;;  %p164_p7 = scmp.lt.s32.totalorder %s711_s23, 4 }
   0xc   : > { %p788_p6 = por %p157_p3, %p43_p0  ;;  %s713_s28 = smov [#allocation6]  }
   0xd   : > { %s925_s25 = scalar_select %p783_p4, 1, 0 }
   0xe   : > { %s926_s26 = scalar_select %p788_p6, 1, 0 }
   0xf   : > { %p793_p8 = pnand %p463_p5, %p164_p7  ;;  %s176_s29 = sshll.u32 %s713_s28, 4  ;;  %s177_s29 = int_to_ptr.vmem [resolvable:$true] %s176_s29 }
  0x10   : > { %s806_s6 = sadd.s32 1, %s711_s23   ;;  %s30_s7 = sadd.s32 1, %s707_s22 }
  0x11   : > { %s927_s27 = scalar_select %p793_p8, 1, 0 }
  0x12   : > { %p536_p9 = pneg %p793_p8  ;;  %s27_s8 = ssub.s32 %s711_s23, %s806_s6 }
  0x13   : > { %s600_s9 = scalar_lea.vmem %s177_s29, 2048  ;;  %p608_p3 = scmp.lt.s32.totalorder %s177_s29, %s177_s29 }
  0x14   : > { %p801_p10 = pnand %p536_p9, %p921_p1  ;;  %p601_p12 = scmp.ne.s32.totalorder %s177_s29, %s600_s9 }
  0x15   : > { %p609_p5 = scmp.lt.s32.totalorder %s600_s9, %s600_s9 }
  0x16   : > { %p591_p11 = pneg %p801_p10 }
  0x17   : > { %p610_p7 = por %p609_p5, %p608_p3 }
  0x18   : > { %p603_p13 = pnand %p601_p12, %p591_p11 }
  0x1a   : > { %p604_p0 = pneg %p603_p13 }
  0x1c   : > { %p611_p2 = pnand %p610_p7, %p604_p0 }
  0x1e   : > { %614 = shalt.err (!%p611_p2)
}
  0x1f   : > { %s714_s10 = smov 128   ;;  %s715_s11 = smov 8  }
  0x20   : > { %539 = dma.hbm_to_vmem [thread:$0]  (!%p801_p10), %s916_s1, 2048, %s177_s29, [#allocation7], %s714_s10, %s714_s10, %s715_s11  }
  0x21   : > { %p28_p9 = scmp.eq.s32.totalorder %s27_s8, 0  ;;  %p37_p11 = scmp.ne.s32.totalorder %s707_s22, %s703_s21 }
  0x22   : > { %p38_p12 = scmp.eq.s32.totalorder %s711_s23, 0  ;;  %p549_p2 = scmp.lt.s32.totalorder %s711_s23, 3 }
  0x23   : > { %s823_s14 = scalar_select %p28_p9, %s707_s22, %s30_s7  }
  0x24   : > { %p39_p13 = por %p38_p12, %p37_p11  ;;  %p929_p0 = scmp.eq.s32.totalorder %s774_s4, 2 }
  0x25   : > { %s199_s16 = sand.u32 1, %s707_s22   ;;  %s467_s17 = sshll.u32 %s711_s23, 7 }
  0x26   : > { %p827_p3 = por %p929_p0, %p37_p11  ;;  %s466_s18 = sshll.u32 %s199_s16, 3 }
  0x27   : > { %s836_s28 = scalar_lea.hbm %s915_s0, %s467_s17  ;;  %s203_s29 = scalar_lea.vmem [#allocation3], %s466_s18 }
  0x28   : > { %s930_s15 = scalar_select %p827_p3, 1, 0 }
  0x29   : > { %s210_s30 = sshll.u32 %s203_s29, 4  ;;  %p838_p10 = pnand %p549_p2, %p39_p13  ;;  %s211_s30 = int_to_ptr.vmem [resolvable:$true] %s210_s30 }
  0x2a   : > { %s200_s8 = scalar_lea.sflag [#allocation4], %s199_s16  ;;  %s615_s9 = scalar_lea.hbm %s836_s28, 128 }
  0x2b   : > { %p616_p5 = scmp.ne.s32.totalorder %s836_s28, %s615_s9  ;;  %p617_p7 = pneg %p838_p10 }
  0x2c   : > { %s620_s12 = scalar_lea.hbm %s915_s0, 384  ;;  %p621_p12 = scmp.lt.s32.totalorder %s836_s28, %s915_s0 }
  0x2d   : > { %p618_p9 = pnand %p617_p7, %p616_p5  ;;  %p622_p2 = scmp.lt.s32.totalorder %s620_s12, %s615_s9 }
  0x2f   : > { %p619_p11 = pneg %p618_p9  ;;  %p623_p13 = por %p622_p2, %p621_p12 }
  0x31   : > { %p624_p0 = pnand %p623_p13, %p619_p11 }
  0x33   : > { %627 = shalt.err (!%p624_p0)
}
  0x34   : > { %s628_s18 = scalar_lea.vmem %s211_s30, 128  ;;  %s716_s16 = smov [#allocation3]  }
  0x35   : > { %p629_p1 = scmp.ne.s32.totalorder %s211_s30, %s628_s18  ;;  %s633_s19 = sshll.u32 %s716_s16, 4  ;;  %s634_s19 = int_to_ptr.vmem [resolvable:$false] %s633_s19 }
  0x36   : > { %s635_s24 = scalar_lea.vmem %s634_s19, 256  ;;  %p636_p5 = scmp.lt.s32.totalorder %s211_s30, %s634_s19 }
  0x37   : > { %p631_p6 = pnand %p629_p1, %p617_p7  ;;  %p637_p9 = scmp.lt.s32.totalorder %s635_s24, %s628_s18 }
  0x39   : > { %p632_p3 = pneg %p631_p6  ;;  %p638_p4 = por %p637_p9, %p636_p5 }
  0x3b   : > { %p639_p8 = pnand %p638_p4, %p632_p3 }
  0x3d   : > { %642 = shalt.err (!%p639_p8)
}
  0x3e   : > { %543 = dma.hbm_to_vmem [thread:$0]  (!%p838_p10), %s836_s28, 128, %s211_s30, %s200_s8  }
  0x3f   : > { %p932_p11 = scmp.ne.s32.totalorder %s927_s27, 0 }
  0x40   : > { %s859_s29 = sand.u32 (!%p932_p11), 1, %s703_s21   ;;  %p933_p1 = scmp.ne.s32.totalorder (!%p932_p11), %s925_s25, 0 }
  0x41   : > { %219 = sbr.rel (%p932_p11) target bundleno = 461 (0x1cd), region = 40  ;;  %s469_s9 = sshll.u32 (!%p932_p11), %s859_s29, 3 }
  0x42   : > { %s222_s10 = scalar_lea.sflag (!%p932_p11), [#allocation4], %s859_s29  ;;  %s863_s11 = scalar_lea.vmem (!%p932_p11), [#allocation3], %s469_s9 }
  0x46   : > { %686 = dma.done.wait (%p933_p1), %s222_s10, 128  }
  0x47   : > { %688 = vsyncadd (%p933_p1), %s222_s10, 4294967168  ;;  %p934_p4 = scmp.eq.s32.totalorder %s774_s4, 0 }
  0x49   : > { %690 = dma.done.wait (%p934_p4), [#allocation7], 2048   ;;  %p935_p6 = pmov %p934_p4 }
  0x4a   : > { %v717_v0 = vmov 0.0   ;;  %vm718_vm0 = vmmov 0   ;;  %v271_v1 = vld [vmem:[#allocation6 + $0x78] sm:$0xff]  ;;  %v270_v2 = vld [vmem:[#allocation6 + $0x70] sm:$0xff]  ;;  %v269_v3 = vld [vmem:[#allocation6 + $0x68] sm:$0xff]  ;;  %s360_s7 = sld [smem:[#allocation2]]  ;;  %v364_v25 = vlaneseq }
  0x4b   : > { %692 = vsyncadd (%p935_p6), [#allocation7], 4294965248  ;;  %493 = vmatprep.subr.mxu0 %v717_v0  ;;  %525 = vmatprep.mubr.msk.f32.mxu0 %vm718_vm0, %v717_v0  ;;  %v268_v4 = vld [vmem:[#allocation6 + $0x60] sm:$0xff]  ;;  %v267_v5 = vld [vmem:[#allocation6 + $0x58] sm:$0xff]  ;;  %s473_s8 = sshll.u32 %s774_s4, 4  ;;  %s254_s12 = scalar_lea.vmem [#allocation8], %s859_s29 }
  0x4c   : > { %494 = vmatpush3.msra.mxu0 %v271_v1  ;;  %v266_v6 = vld [vmem:[#allocation6 + $0x50] sm:$0xff]  ;;  %v265_v7 = vld [vmem:[#allocation6 + $0x48] sm:$0xff]  ;;  %v264_v8 = vld [vmem:[#allocation6 + $0x40] sm:$0xff]  ;;  %v365_v26 = vand.u32 127, %v364_v25  ;;  %v367_v27 = vshrl.u32 %v364_v25, 7  ;;  %s386_s13 = sshll.u32 %s254_s12, 4  ;;  %s384_s16 = scalar_lea.hbm %s920_s5, %s473_s8  ;;  %s387_s13 = int_to_ptr.vmem [resolvable:$true] %s386_s13 }
  0x4d   : > { %495 = vmatprep.subr.mxu0 %v717_v0  ;;  %v263_v9 = vld [vmem:[#allocation6 + $0x38] sm:$0xff]  ;;  %v262_v10 = vld [vmem:[#allocation6 + $0x30] sm:$0xff]  ;;  %v261_v11 = vld [vmem:[#allocation6 + $0x28] sm:$0xff]  ;;  %vm371_vm1 = vcmask 57344   ;;  %s374_s19 = scalar_lea.sflag [#allocation5], %s859_s29  ;;  %s643_s24 = scalar_lea.vmem %s387_s13, 16 }
  0x4e   : > { %496 = vmatpush3.msra.mxu0 %v270_v2  ;;  %v260_v12 = vld [vmem:[#allocation6 + $0x20] sm:$0xff]  ;;  %v259_v13 = vld [vmem:[#allocation6 + $0x18] sm:$0xff]  ;;  %v258_v14 = vld [vmem:[#allocation6 + $0x10] sm:$0xff]  ;;  %v368_v29 = vsub.s32 %v365_v26, %v367_v27  ;;  %p644_p8 = scmp.ne.s32.totalorder %s387_s13, %s643_s24  ;;  %p936_p3 = scmp.ne.s32.totalorder %s930_s15, 0 }
  0x4f   : > { %497 = vmatprep.subr.mxu0 %v717_v0  ;;  %v257_v15 = vld [vmem:[#allocation6 + $0x8] sm:$0xff]  ;;  %v256_v16 = vld [vmem:[#allocation6] sm:$0xff]  ;;  %v255_v17 = vld [vmem:[%s863_s11] sm:$0xff]  ;;  %s719_s9 = smov [#allocation8]  }
  0x50   : > { %498 = vmatpush3.msra.mxu0 %v269_v3  ;;  %v471_v18 = vld [vmem:[%s917_s2] ss:$0 sm:$0xff]  ;;  %v361_v28 = vstv %s360_s7  ;;  %p645_p10 = pnand %p644_p8, %p936_p3  ;;  %s647_s10 = sshll.u32 %s719_s9, 4  ;;  %s648_s10 = int_to_ptr.vmem [resolvable:$false] %s647_s10 }
  0x51   : > { %499 = vmatprep.subr.mxu0 %v717_v0  ;;  %v472_v22 = vld [vmem:[%s918_s3] ss:$0 sm:$0xff]  ;;  %s649_s4 = scalar_lea.vmem %s648_s10, 32  ;;  %p650_p12 = scmp.lt.s32.totalorder %s387_s13, %s648_s10 }
  0x52   : > { %500 = vmatpush3.msra.mxu0 %v268_v4  ;;  %p646_p7 = pneg %p645_p10  ;;  %p651_p2 = scmp.lt.s32.totalorder %s649_s4, %s643_s24 }
  0x53   : > { %501 = vmatprep.subr.mxu0 %v717_v0 }
  0x54   : > { %502 = vmatpush3.msra.mxu0 %v267_v5  ;;  %p652_p13 = por %p651_p2, %p650_p12 }
  0x55   : > { %503 = vmatprep.subr.mxu0 %v717_v0 }
  0x56   : > { %504 = vmatpush3.msra.mxu0 %v266_v6  ;;  %p653_p0 = pnand %p652_p13, %p646_p7 }
  0x57   : > { %505 = vmatprep.subr.mxu0 %v717_v0 }
  0x58   : > { %506 = vmatpush3.msra.mxu0 %v265_v7 }
  0x59   : > { %507 = vmatprep.subr.mxu0 %v717_v0 }
  0x5a   : > { %508 = vmatpush3.msra.mxu0 %v264_v8 }
  0x5b   : > { %509 = vmatprep.subr.mxu0 %v717_v0 }
  0x5c   : > { %510 = vmatpush3.msra.mxu0 %v263_v9 }
  0x5d   : > { %511 = vmatprep.subr.mxu0 %v717_v0 }
  0x5e   : > { %512 = vmatpush3.msra.mxu0 %v262_v10 }
  0x5f   : > { %513 = vmatprep.subr.mxu0 %v717_v0 }
  0x60   : > { %514 = vmatpush3.msra.mxu0 %v261_v11 }
  0x61   : > { %515 = vmatprep.subr.mxu0 %v717_v0 }
  0x62   : > { %516 = vmatpush3.msra.mxu0 %v260_v12 }
  0x63   : > { %517 = vmatprep.subr.mxu0 %v717_v0 }
  0x64   : > { %518 = vmatpush3.msra.mxu0 %v259_v13 }
  0x65   : > { %519 = vmatprep.subr.mxu0 %v717_v0 }
  0x66   : > { %520 = vmatpush3.msra.mxu0 %v258_v14 }
  0x67   : > { %521 = vmatprep.subr.mxu0 %v717_v0 }
  0x68   : > { %522 = vmatpush3.msra.mxu0 %v257_v15 }
  0x69   : > { %523 = vmatprep.subr.mxu0 %v717_v0 }
  0x6a   : > { %524 = vmatpush3.msra.mxu0 %v256_v16 }
  0x6b   : > { %526 = vmatmul.mubr.f32.vlgmr.msra.gmra.mxu0 %v255_v17 }
 0x12b   : > { %v345_v19 = vpop.f32.mrf.mxu0 }
 0x12c   : > { %v346_v20 = vadd.f32 %v471_v18, %v345_v19 }
 0x12d   : > { %v527_v21 = vpop.f32.mrf.mxu0 }
 0x12e   : > { %v349_v23 = vmax.f32 %v346_v20, 0.0 }
 0x130   : > { %v357_v24 = vmul.f32 %v472_v22, %v349_v23 }
 0x132   : > { %358 = vadd.xlane.f32.xlu0 %v357_v24 }
 0x1bb   : > { %v359_v30 = vpop.xlane.xlu0 %358 }
 0x1bc   : > { %v362_v31 = vadd.f32 %v361_v28, %v359_v30 }
 0x1be   : > { %v369_v32 = vrot.slane %v362_v31, %v368_v29 }
 0x1c0   : > { %372 = vst.msk [vmem:[%s254_s12] sm:$0x1] %vm371_vm1, %v369_v32 }
 0x1c1   : > { %656 = shalt.err (!%p653_p0)
}
 0x1c2   : > { %s657_s11 = scalar_lea.hbm %s384_s16, 16  ;;  %s661_s27 = scalar_lea.hbm %s920_s5, 48 }
 0x1c3   : > { %p658_p5 = scmp.ne.s32.totalorder %s384_s16, %s657_s11  ;;  %p662_p1 = scmp.lt.s32.totalorder %s384_s16, %s920_s5 }
 0x1c4   : > { %p663_p4 = scmp.lt.s32.totalorder %s661_s27, %s657_s11 }
 0x1c5   : > { %p659_p9 = pnand %p658_p5, %p936_p3 }
 0x1c6   : > { %p664_p6 = por %p663_p4, %p662_p1 }
 0x1c7   : > { %p660_p11 = pneg %p659_p9 }
 0x1c9   : > { %p665_p8 = pnand %p664_p6, %p660_p11 }
 0x1cb   : > { %668 = shalt.err (!%p665_p8)
}
 0x1cc   : > { %534 = dma.vmem_to_hbm [thread:$0]  (%p936_p3), %s387_s13, 16, %s384_s16, %s374_s19  }
 0x1cd PF: > { %p551_p10 = scmp.ge.s32.totalorder %s711_s23, 2  ;;  %s398_s7 = sand.u32 1, %s699_s20  }
 0x1ce   : > { %p937_p7 = scmp.ne.s32.totalorder %s926_s26, 0  ;;  %s399_s8 = scalar_lea.sflag [#allocation5], %s398_s7 }
 0x1d0   : > { %p545_p12 = pnand %p551_p10, %p937_p7 }
 0x1d2   : > { %p546_p2 = pneg %p545_p12 }
 0x1d4   : > { %694 = dma.done.wait (%p546_p2), %s399_s8, 16  }
 0x1d5   : > { %696 = vsyncadd (%p546_p2), %s399_s8, 4294967280  ;;  %p20_p13 = scmp.ge.s32.totalorder %s806_s6, 5   ;;  %s938_s20 = smov %s703_s21 }
 0x1d6   : > { %s939_s21 = smov %s707_s22  ;;  %s940_s22 = smov %s823_s14 }
 0x1d7   : > { %s941_s23 = smov %s806_s6  ;;  %22 = sbr.rel (!%p20_p13) target bundleno = 8 (0x8), region = 89 }
 0x1dc   :  { %403 = vsyncpa [#allocation4], 1 }
 0x1dd   :  { %405 = vsyncpa [#allocation4 + $0x1], 1 }
 0x1de   :  { %406 = vsyncpa [#allocation7], 1 }
 0x1df   :  { %407 = vsyncpa [#allocation5], 1 }
 0x1e0   :  { %409 = vsyncpa [#allocation5 + $0x1], 1 }

</bundles_post_ra>
